<compile_context>
chip_gen: v7x
topology: tpu7x:2x2x1
jax: 0.10.0
libtpu: 0.0.40
codegen_flags: <defaults>
</compile_context>

<pallas_src>
import functools

import jax
import jax.numpy as jnp
from jax.experimental import pallas as pl
from jax.experimental.pallas import tpu as pltpu


def _sagan_attn_kernel(x_ref, wqkv_ref, bqkv_ref, gamma_ref,
                       out_ref, attn_ref, *, c, c8, bt):
    gamma = gamma_ref[0]
    w_qkv = wqkv_ref[...]           # (C + 2*C8, C)  -- hoisted out of the batch loop
    b_qkv = bqkv_ref[...]           # (C + 2*C8, 1)

    for bi in range(bt):            # static unroll over the batch tile
        x_cn = x_ref[bi]            # (C, N), channel-major

        # Fused V/Q/K projection: one MXU matmul + one fused bias add.
        qkv = jnp.dot(w_qkv, x_cn, preferred_element_type=jnp.float32) + b_qkv
        v = qkv[:c, :]              # (C,  N)
        q = qkv[c:c + c8, :]        # (C8, N)
        k = qkv[c + c8:, :]         # (C8, N)

        # attention_map[j, i] = softmax_i( S[i, j] ),  S[i, j] = <q_i, k_j>.
        # raw[j, i] = sum_d k[d, j] * q[d, i]: only a tiny (C8, N) transpose, never an
        # (N, N) one, and the result is already in the orientation we return.
        raw = jnp.dot(k.T, q, preferred_element_type=jnp.float32)        # (N_j, N_i)
        raw_max = jnp.max(raw, axis=-1, keepdims=True)
        e = jnp.exp(raw - raw_max)
        denom = jnp.sum(e, axis=-1, keepdims=True)
        attn = e * pl.reciprocal(denom, approx=True)                     # (N_j, N_i)

        # o[c, j] = sum_i v[c, i] * attn[j, i]  (NT dot_general — no transpose).
        o = jax.lax.dot_general(v, attn, (((1,), (1,)), ((), ())),
                                preferred_element_type=jnp.float32)      # (C, N)

        out_ref[bi] = (x_cn + gamma * o).astype(out_ref.dtype)
        attn_ref[bi] = attn.astype(attn_ref.dtype)


def _pick_batch_tile(B, N, C, c_tot, budget_bytes=24 * 1024 * 1024):
    # Rough per-image VMEM estimate (f32): attn in/out (double-buffered) + score temps
    # + x/out blocks + fused qkv.
    per_img = 4 * (4 * N * N + 4 * C * N + 2 * c_tot * N)
    bt = max(1, min(B, budget_bytes // max(per_img, 1)))
    if B >= 2:
        # Keep at least 2 grid steps so both v7x TensorCores get work.
        bt = max(1, min(bt, B // 2))
    while B % bt:                   # tile must divide the batch (no masking in-kernel)
        bt -= 1
    return bt


def self_attention_pallas(x, wq, bq, wk, bk, wv, bv, gamma, *, batch_tile=None):
    """x: (B, C, H, W) float32 (NCHW). Returns (out (B,C,H,W), attention_map (B,N,N))."""
    B, C, H, W = x.shape
    N = H * W
    C8 = wq.shape[1]
    c_tot = C + 2 * C8

    # Channel-major flatten: reshape only, no HBM transpose.
    x_cn = x.reshape(B, C, N)

    # Fuse + pre-transpose the 1x1-conv weights once (tiny, outside the kernel):
    #   qkv = W_qkv^T @ x_cn + b_qkv,  W_qkv^T : (C + 2*C8, C), order [V; Q; K].
    w_qkv_t = jnp.concatenate([wv.T, wq.T, wk.T], axis=0)                 # (c_tot, C)
    b_qkv = jnp.concatenate(
        [bv.reshape(-1), bq.reshape(-1), bk.reshape(-1)])[:, None]        # (c_tot, 1)

    bt = batch_tile if batch_tile is not None else _pick_batch_tile(B, N, C, c_tot)

    kernel = functools.partial(_sagan_attn_kernel, c=C, c8=C8, bt=bt)

    out_cn, attn = pl.pallas_call(
        kernel,
        grid=(B // bt,),
        in_specs=[
            pl.BlockSpec((bt, C, N), lambda b: (b, 0, 0)),                # x (channel-major)
            pl.BlockSpec((c_tot, C), lambda b: (0, 0)),                   # fused W_qkv^T
            pl.BlockSpec((c_tot, 1), lambda b: (0, 0)),                   # fused bias
            pl.BlockSpec(memory_space=pltpu.MemorySpace.SMEM),            # gamma scalar
        ],
        out_specs=[
            pl.BlockSpec((bt, C, N), lambda b: (b, 0, 0)),                # out (channel-major)
            pl.BlockSpec((bt, N, N), lambda b: (b, 0, 0)),                # attention_map
        ],
        out_shape=[
            jax.ShapeDtypeStruct((B, C, N), jnp.float32),
            jax.ShapeDtypeStruct((B, N, N), jnp.float32),
        ],
        compiler_params=pltpu.CompilerParams(
            dimension_semantics=("parallel",),
            vmem_limit_bytes=64 * 1024 * 1024,
        ),
    )(x_cn, w_qkv_t, b_qkv, gamma)

    out = out_cn.reshape(B, C, H, W)   # reshape only, no transpose
    return out, attn


def self_attention_reference(x, wq, bq, wk, bk, wv, bv, gamma):
    """Pure-JAX replica of the PyTorch forward, for verification."""
    B, C, H, W = x.shape
    N = H * W
    x_flat = jnp.transpose(x.reshape(B, C, N), (0, 2, 1))                 # (B, N, C)
    q = jnp.einsum('bnc,cd->bnd', x_flat, wq) + bq                        # proj_query
    k = jnp.einsum('bnc,cd->bnd', x_flat, wk) + bk
    v = jnp.einsum('bnc,cd->bnd', x_flat, wv) + bv
    s = jnp.einsum('bid,bjd->bij', q, k)                                  # (B, N, N)
    a_t = jax.nn.softmax(s, axis=1)                                       # softmax(dim=-2)
    o = jnp.einsum('bic,bij->bcj', v, a_t)                                # (B, C, N)
    out = x + gamma[0] * o.reshape(B, C, H, W)
    attn = jnp.transpose(a_t, (0, 2, 1))
    return out, attn


if __name__ == "__main__":
    B, C, H, W = 2, 16, 8, 8          # in_dim = 16  ->  C//8 = 2
    C8 = C // 8
    N = H * W

    key = jax.random.PRNGKey(0)
    kx, kwq, kbq, kwk, kbk, kwv, kbv = jax.random.split(key, 7)

    x = jax.random.normal(kx, (B, C, H, W), dtype=jnp.float32)

    # Deterministic synthetic parameters (1x1 conv weights as (C_in, C_out) matrices).
    wq = 0.1 * jax.random.normal(kwq, (C, C8), dtype=jnp.float32)
    bq = 0.1 * jax.random.normal(kbq, (1, C8), dtype=jnp.float32)
    wk = 0.1 * jax.random.normal(kwk, (C, C8), dtype=jnp.float32)
    bk = 0.1 * jax.random.normal(kbk, (1, C8), dtype=jnp.float32)
    wv = 0.1 * jax.random.normal(kwv, (C, C), dtype=jnp.float32)
    bv = 0.1 * jax.random.normal(kbv, (1, C), dtype=jnp.float32)
    # PyTorch inits gamma to 0; use a nonzero value so the attention path is exercised.
    gamma = jnp.array([0.5], dtype=jnp.float32)

    out, attn = self_attention_pallas(x, wq, bq, wk, bk, wv, bv, gamma)
    out = jax.block_until_ready(out)
    attn = jax.block_until_ready(attn)

    ref_out, ref_attn = self_attention_reference(x, wq, bq, wk, bk, wv, bv, gamma)

    assert out.shape == (B, C, H, W) and attn.shape == (B, N, N)
    assert jnp.allclose(out, ref_out, rtol=2e-2, atol=2e-2)
    assert jnp.allclose(attn, ref_attn, rtol=2e-2, atol=2e-2)

    print("KERNEL_OK")
</pallas_src>

<mosaic_0001>
module attributes {stable_mosaic.version = 11 : i64} {
  func.func @_sagan_attn_kernel(%arg0: i32, %arg1: memref<1x16x64xf32, #tpu.memory_space<vmem>>, %arg2: memref<20x16xf32, #tpu.memory_space<vmem>>, %arg3: memref<20x1xf32, #tpu.memory_space<vmem>>, %arg4: memref<1xf32, #tpu.memory_space<smem>>, %arg5: memref<1x16x64xf32, #tpu.memory_space<vmem>>, %arg6: memref<1x64x64xf32, #tpu.memory_space<vmem>>) attributes {dimension_semantics = [#tpu.dimension_semantics<parallel>], iteration_bounds = array<i64: 2>, scalar_prefetch = 0 : i64, scratch_operands = 0 : i64, tpu.core_type = #tpu.core_type<tc>, window_params = [{transform_indices = @transform_0, window_bounds = array<i64: 1, 16, 64>}, {pipeline_mode = #tpu.pipeline_mode<synchronous>, transform_indices = @transform_1, window_bounds = array<i64: 20, 16>}, {pipeline_mode = #tpu.pipeline_mode<synchronous>, transform_indices = @transform_2, window_bounds = array<i64: 20, 1>}, {transform_indices = @transform_3, window_bounds = array<i64: 1>}, {transform_indices = @transform_4, window_bounds = array<i64: 1, 16, 64>}, {transform_indices = @transform_5, window_bounds = array<i64: 1, 64, 64>}]} {
    %c0 = arith.constant 0 : index
    %0 = memref.load %arg4[%c0] : memref<1xf32, #tpu.memory_space<smem>>
    %c0_0 = arith.constant 0 : index
    %c0_1 = arith.constant 0 : index
    %1 = vector.load %arg2[%c0_0, %c0_1] : memref<20x16xf32, #tpu.memory_space<vmem>>, vector<20x16xf32>
    %c0_2 = arith.constant 0 : index
    %c0_3 = arith.constant 0 : index
    %2 = vector.load %arg3[%c0_2, %c0_3] : memref<20x1xf32, #tpu.memory_space<vmem>>, vector<20x1xf32>
    %c0_4 = arith.constant 0 : index
    %c0_5 = arith.constant 0 : index
    %c0_6 = arith.constant 0 : index
    %3 = vector.load %arg1[%c0_4, %c0_5, %c0_6] : memref<1x16x64xf32, #tpu.memory_space<vmem>>, vector<1x16x64xf32>
    %4 = vector.shape_cast %3 : vector<1x16x64xf32> to vector<16x64xf32>
    %cst = arith.constant dense<0.000000e+00> : vector<20x64xf32>
    %5 = tpu.matmul %1, %4, %cst {dimension_numbers = #tpu.dot_dimension_numbers<[1], [0], [0], [1], [0, 0, 1, 1], [], []>} : vector<20x16xf32>, vector<16x64xf32>, vector<20x64xf32> -> vector<20x64xf32>
    %6 = vector.broadcast %2 : vector<20x1xf32> to vector<20x64xf32>
    %7 = arith.addf %5, %6 : vector<20x64xf32>
    %8 = vector.extract_strided_slice %7 {offsets = [0, 0], sizes = [16, 64], strides = [1, 1]} : vector<20x64xf32> to vector<16x64xf32>
    %9 = vector.extract_strided_slice %7 {offsets = [16, 0], sizes = [2, 64], strides = [1, 1]} : vector<20x64xf32> to vector<2x64xf32>
    %10 = vector.extract_strided_slice %7 {offsets = [18, 0], sizes = [2, 64], strides = [1, 1]} : vector<20x64xf32> to vector<2x64xf32>
    %11 = tpu.transpose %10, [1, 0] : vector<2x64xf32> -> vector<64x2xf32>
    %cst_7 = arith.constant dense<0.000000e+00> : vector<64x64xf32>
    %12 = tpu.matmul %11, %9, %cst_7 {dimension_numbers = #tpu.dot_dimension_numbers<[1], [0], [0], [1], [0, 0, 1, 1], [], []>} : vector<64x2xf32>, vector<2x64xf32>, vector<64x64xf32> -> vector<64x64xf32>
    %cst_8 = arith.constant dense<0xFF800000> : vector<64xf32>
    %13 = vector.multi_reduction <maximumf>, %12, %cst_8 [1] : vector<64x64xf32> to vector<64xf32>
    %14 = vector.shape_cast %13 : vector<64xf32> to vector<64x1xf32>
    %15 = vector.broadcast %14 : vector<64x1xf32> to vector<64x64xf32>
    %16 = arith.subf %12, %15 : vector<64x64xf32>
    %17 = math.exp %16 : vector<64x64xf32>
    %cst_9 = arith.constant dense<0.000000e+00> : vector<64xf32>
    %18 = vector.multi_reduction <add>, %17, %cst_9 [1] : vector<64x64xf32> to vector<64xf32>
    %19 = vector.shape_cast %18 : vector<64xf32> to vector<64x1xf32>
    %20 = tpu.reciprocal %19 {approx = true} : vector<64x1xf32> -> vector<64x1xf32>
    %21 = vector.broadcast %20 : vector<64x1xf32> to vector<64x64xf32>
    %22 = arith.mulf %17, %21 : vector<64x64xf32>
    %cst_10 = arith.constant dense<0.000000e+00> : vector<16x64xf32>
    %23 = tpu.matmul %8, %22, %cst_10 {dimension_numbers = #tpu.dot_dimension_numbers<[1], [1], [0], [0], [0, 0, 1, 0], [], []>} : vector<16x64xf32>, vector<64x64xf32>, vector<16x64xf32> -> vector<16x64xf32>
    %24 = vector.broadcast %0 : f32 to vector<16x64xf32>
    %25 = arith.mulf %24, %23 : vector<16x64xf32>
    %26 = arith.addf %4, %25 : vector<16x64xf32>
    %c0_11 = arith.constant 0 : index
    %c0_12 = arith.constant 0 : index
    %c0_13 = arith.constant 0 : index
    %27 = vector.load %arg5[%c0_11, %c0_12, %c0_13] : memref<1x16x64xf32, #tpu.memory_space<vmem>>, vector<1x16x64xf32>
    %28 = vector.shape_cast %27 : vector<1x16x64xf32> to vector<16x64xf32>
    %29 = vector.shape_cast %26 : vector<16x64xf32> to vector<1x16x64xf32>
    tpu.vector_store %arg5[%c0_11, %c0_12, %c0_13], %29 {strides = array<i32>} : memref<1x16x64xf32, #tpu.memory_space<vmem>>, vector<1x16x64xf32>,
    %c0_14 = arith.constant 0 : index
    %c0_15 = arith.constant 0 : index
    %c0_16 = arith.constant 0 : index
    %30 = vector.load %arg6[%c0_14, %c0_15, %c0_16] : memref<1x64x64xf32, #tpu.memory_space<vmem>>, vector<1x64x64xf32>
    %31 = vector.shape_cast %30 : vector<1x64x64xf32> to vector<64x64xf32>
    %32 = vector.shape_cast %22 : vector<64x64xf32> to vector<1x64x64xf32>
    tpu.vector_store %arg6[%c0_14, %c0_15, %c0_16], %32 {strides = array<i32>} : memref<1x64x64xf32, #tpu.memory_space<vmem>>, vector<1x64x64xf32>,
    return
  }
  func.func @transform_0(%arg0: i32) -> (i32, i32, i32) {
    %c0_i32 = arith.constant 0 : i32
    %c0_i32_0 = arith.constant 0 : i32
    %c0_i32_1 = arith.constant 0 : i32
    return %arg0, %c0_i32, %c0_i32_0 : i32, i32, i32
  }
  func.func @transform_1(%arg0: i32) -> (i32, i32) {
    %c0_i32 = arith.constant 0 : i32
    %c0_i32_0 = arith.constant 0 : i32
    %c0_i32_1 = arith.constant 0 : i32
    return %c0_i32, %c0_i32_0 : i32, i32
  }
  func.func @transform_2(%arg0: i32) -> (i32, i32) {
    %c0_i32 = arith.constant 0 : i32
    %c0_i32_0 = arith.constant 0 : i32
    %c0_i32_1 = arith.constant 0 : i32
    return %c0_i32, %c0_i32_0 : i32, i32
  }
  func.func @transform_3(%arg0: i32) -> i32 {
    %c0_i32 = arith.constant 0 : i32
    %c0_i32_0 = arith.constant 0 : i32
    return %c0_i32 : i32
  }
  func.func @transform_4(%arg0: i32) -> (i32, i32, i32) {
    %c0_i32 = arith.constant 0 : i32
    %c0_i32_0 = arith.constant 0 : i32
    %c0_i32_1 = arith.constant 0 : i32
    return %arg0, %c0_i32, %c0_i32_0 : i32, i32, i32
  }
  func.func @transform_5(%arg0: i32) -> (i32, i32, i32) {
    %c0_i32 = arith.constant 0 : i32
    %c0_i32_0 = arith.constant 0 : i32
    %c0_i32_1 = arith.constant 0 : i32
    return %arg0, %c0_i32, %c0_i32_0 : i32, i32, i32
  }
}

</mosaic_0001>

<bundles_post_ra>
// kernel: tpu_custom_call.1
= control target key start
LH: loop header
LB: loop body
LE: loop exit
PB: predicated region body
PF: predicated region fallthrough
CT: control target
= control target key end

     0   :  { %s1800_s0 = inlined_call_operand.hbm [shape: f32[2,16,64], index: 0, kind: input, shape index: {}]   ;;  %s1801_s1 = inlined_call_operand.hbm [shape: f32[20,16], index: 1, kind: input, shape index: {}]   ;;  %s1802_s2 = inlined_call_operand.hbm [shape: f32[20,1], index: 2, kind: input, shape index: {}]   ;;  %s1803_s3 = inlined_call_operand.<no memory space> [shape: f32[1], index: 3, kind: input, shape index: {}]   ;;  %s1804_s4 = inlined_call_operand.hbm [shape: f32[2,16,64], index: 4, kind: output, shape index: {0}]   ;;  %s1805_s5 = inlined_call_operand.hbm [shape: f32[2,64,64], index: 5, kind: output, shape index: {1}]  }
   0x1   :  { %11 = sst [smem:[#allocation2]] %s1803_s3 }
   0x2   :  { %12 = vsyncpa [#allocation4], 0 }
   0x3   :  { %14 = vsyncpa [#allocation4 + $0x1], 0 }
   0x4   :  { %15 = vsyncpa [#allocation7], 0 }
   0x5   :  { %16 = vsyncpa [#allocation5], 0 }
   0x6   :  { %18 = vsyncpa [#allocation5 + $0x1], 0 }
   0x7   :  { %19 = vsyncpa [#allocation11], 0 }
   0x8   :  { %21 = vsyncpa [#allocation11 + $0x1], 0  ;;  %s1428_s20 = smov 0   ;;  %s1430_s21 = smov 0  }
   0x9   :  { %s1432_s22 = smov 0   ;;  %s1434_s23 = smov 0  }
   0xa LB: > { %s1449_s3 = sadd.s32 4294967295, %s1380_s23   ;;  %s934_s24 = sadd.s32 4294967294, %s1380_s23   ;;  %s1380_s23 = sphi %s1434_s23, %s1827_s23   ;;  %s1376_s22 = sphi %s1432_s22, %s1826_s22   ;;  %s1372_s21 = sphi %s1430_s21, %s1825_s21   ;;  %s1368_s20 = sphi %s1428_s20, %s1824_s20  }
   0xb   : > { %p47_p0 = scmp.ne.s32.totalorder %s1372_s21, %s1368_s20  ;;  %p1806_p1 = scmp.eq.s32.totalorder %s1449_s3, 0 }
   0xc   : > { %p140_p3 = scmp.eq.s32.totalorder %s934_s24, 1  ;;  %p935_p5 = scmp.ge.s32.totalorder %s1380_s23, 1 }
   0xd   : > { %p1458_p4 = por %p1806_p1, %p47_p0  ;;  %p173_p7 = scmp.lt.s32.totalorder %s1380_s23, 3 }
   0xe   : > { %p1463_p6 = por %p140_p3, %p47_p0  ;;  %s1382_s28 = smov [#allocation6]  }
   0xf   : > { %s1809_s25 = scalar_select %p1458_p4, 1, 0 }
  0x10   : > { %s1810_s26 = scalar_select %p1463_p6, 1, 0 }
  0x11   : > { %p1468_p8 = pnand %p935_p5, %p173_p7  ;;  %s185_s29 = sshll.u32 %s1382_s28, 4  ;;  %s1472_s29 = int_to_ptr.vmem [resolvable:$true] %s185_s29 }
  0x12   : > { %s1383_s6 = smov [#allocation8]   ;;  %s1192_s10 = scalar_lea.hbm %s1801_s1, 384 }
  0x13   : > { %p1092_p9 = pneg %p1468_p8  ;;  %s198_s7 = sshll.u32 %s1383_s6, 4  ;;  %s1483_s7 = int_to_ptr.vmem [resolvable:$true] %s198_s7 }
  0x14   : > { %p1193_p12 = scmp.ne.s32.totalorder %s1801_s1, %s1192_s10  ;;  %p1199_p5 = scmp.lt.u32.totalorder %s1192_s10, %s1801_s1 }
  0x15   : > { %p1479_p11 = pnand %p1092_p9, %p1806_p1 }
  0x17   : > { %p1194_p13 = pneg %p1479_p11 }
  0x19   : > { %p1195_p0 = pnand %p1194_p13, %p1193_p12 }
  0x1b   : > { %p1196_p3 = pneg %p1195_p0 }
  0x1d   : > { %p1201_p7 = pnand %p1199_p5, %p1196_p3 }
  0x1f   : > { %1204 = shalt.err (!%p1201_p7)
}
  0x20   : > { %s1205_s15 = scalar_lea.vmem %s1472_s29, 384  ;;  %p1213_p2 = scmp.lt.s32.totalorder %s1472_s29, %s1472_s29 }
  0x21   : > { %p1206_p9 = scmp.ne.s32.totalorder %s1472_s29, %s1205_s15  ;;  %p1214_p12 = scmp.lt.s32.totalorder %s1205_s15, %s1205_s15 }
  0x23   : > { %p1208_p10 = pnand %p1206_p9, %p1194_p13  ;;  %p1215_p0 = por %p1214_p12, %p1213_p2 }
  0x25   : > { %p1209_p1 = pneg %p1208_p10 }
  0x27   : > { %p1216_p6 = pnand %p1215_p0, %p1209_p1 }
  0x29   : > { %1219 = shalt.err (!%p1216_p6)
}
  0x2a   : > { %s1384_s16 = smov 128   ;;  %s1385_s17 = smov 8  }
  0x2b   : > { %1095 = dma.hbm_to_vmem [thread:$0]  (!%p1479_p11), %s1801_s1, 384, %s1472_s29, [#allocation7], %s1384_s16, %s1384_s16, %s1385_s17  }
  0x2c   : > { %s1220_s6 = scalar_lea.hbm %s1802_s2, 384 }
  0x2d   : > { %p1221_p1 = scmp.ne.s32.totalorder %s1802_s2, %s1220_s6  ;;  %p1227_p10 = scmp.lt.u32.totalorder %s1220_s6, %s1802_s2 }
  0x2f   : > { %p1223_p2 = pnand %p1221_p1, %p1194_p13 }
  0x31   : > { %p1224_p6 = pneg %p1223_p2 }
  0x33   : > { %p1229_p3 = pnand %p1227_p10, %p1224_p6 }
  0x35   : > { %1232 = shalt.err (!%p1229_p3)
}
  0x36   : > { %s1233_s29 = scalar_lea.vmem %s1483_s7, 384  ;;  %p1241_p12 = scmp.lt.s32.totalorder %s1483_s7, %s1483_s7 }
  0x37   : > { %p1234_p5 = scmp.ne.s32.totalorder %s1483_s7, %s1233_s29  ;;  %p1242_p0 = scmp.lt.s32.totalorder %s1233_s29, %s1233_s29 }
  0x39   : > { %p1236_p7 = pnand %p1234_p5, %p1194_p13  ;;  %p1243_p1 = por %p1242_p0, %p1241_p12 }
  0x3b   : > { %p1237_p9 = pneg %p1236_p7 }
  0x3d   : > { %p1244_p2 = pnand %p1243_p1, %p1237_p9 }
  0x3f   : > { %1247 = shalt.err (!%p1244_p2)
}
  0x40   : > { %1098 = dma.hbm_to_vmem [thread:$0]  (!%p1479_p11), %s1802_s2, 384, %s1483_s7, [#allocation7], %s1384_s16, %s1384_s16, %s1385_s17  }
  0x41   : > { %s1544_s30 = sadd.s32 1, %s1380_s23   ;;  %s34_s14 = sadd.s32 1, %s1376_s22 }
  0x42   : > { %s31_s15 = ssub.s32 %s1380_s23, %s1544_s30  ;;  %p41_p13 = scmp.ne.s32.totalorder %s1376_s22, %s1372_s21 }
  0x43   : > { %p32_p6 = scmp.eq.s32.totalorder %s31_s15, 0  ;;  %p42_p10 = scmp.eq.s32.totalorder %s1380_s23, 0 }
  0x44   : > { %p1813_p3 = scmp.eq.s32.totalorder %s1449_s3, 1  ;;  %p1112_p7 = scmp.lt.s32.totalorder %s1380_s23, 2 }
  0x45   : > { %s1560_s19 = scalar_select %p32_p6, %s1376_s22, %s34_s14  }
  0x46   : > { %p1554_p5 = por %p1813_p3, %p41_p13  ;;  %p43_p9 = por %p42_p10, %p41_p13 }
  0x47   : > { %s215_s24 = sand.u32 1, %s1376_s22   ;;  %s978_s7 = sshll.u32 %s1380_s23, 8 }
  0x48   : > { %s1814_s18 = scalar_select %p1554_p5, 1, 0 }
  0x49   : > { %s939_s28 = sshll.u32 %s215_s24, 4  ;;  %s1567_s9 = scalar_lea.hbm %s1800_s0, %s978_s7 }
  0x4a   : > { %s219_s10 = scalar_lea.vmem [#allocation3], %s939_s28  ;;  %p1571_p11 = pnand %p1112_p7, %p43_p9 }
  0x4b   : > { %s226_s11 = sshll.u32 %s219_s10, 4  ;;  %s1575_s12 = scalar_lea.sflag [#allocation4], %s215_s24  ;;  %s1569_s11 = int_to_ptr.vmem [resolvable:$true] %s226_s11 }
  0x4c   : > { %s1248_s13 = scalar_lea.hbm %s1567_s9, 256  ;;  %p1250_p0 = pneg %p1571_p11 }
  0x4d   : > { %p1249_p12 = scmp.ne.s32.totalorder %s1567_s9, %s1248_s13  ;;  %s1253_s28 = scalar_lea.hbm %s1800_s0, 512 }
  0x4e   : > { %p1254_p13 = scmp.lt.u32.totalorder %s1567_s9, %s1800_s0  ;;  %p1255_p6 = scmp.lt.u32.totalorder %s1253_s28, %s1248_s13 }
  0x4f   : > { %p1251_p1 = pnand %p1250_p0, %p1249_p12  ;;  %p1257_p3 = scmp.lt.u32.totalorder %s1248_s13, %s1567_s9 }
  0x50   : > { %p1256_p10 = por %p1255_p6, %p1254_p13 }
  0x51   : > { %p1252_p2 = pneg %p1251_p1 }
  0x52   : > { %p1258_p7 = por %p1257_p3, %p1256_p10 }
  0x54   : > { %p1259_p9 = pnand %p1258_p7, %p1252_p2 }
  0x56   : > { %1262 = shalt.err (!%p1259_p9)
}
  0x57   : > { %s1263_s24 = scalar_lea.vmem %s1569_s11, 256  ;;  %s1386_s8 = smov [#allocation3]  }
  0x58   : > { %p1264_p12 = scmp.ne.s32.totalorder %s1569_s11, %s1263_s24  ;;  %s1268_s10 = sshll.u32 %s1386_s8, 4  ;;  %s1269_s10 = int_to_ptr.vmem [resolvable:$false] %s1268_s10 }
  0x59   : > { %s1270_s14 = scalar_lea.vmem %s1269_s10, 512  ;;  %p1271_p4 = scmp.lt.s32.totalorder %s1569_s11, %s1269_s10 }
  0x5a   : > { %p1266_p1 = pnand %p1264_p12, %p1250_p0  ;;  %p1272_p13 = scmp.lt.s32.totalorder %s1270_s14, %s1263_s24 }
  0x5c   : > { %p1267_p5 = pneg %p1266_p1  ;;  %p1273_p6 = por %p1272_p13, %p1271_p4 }
  0x5e   : > { %p1274_p10 = pnand %p1273_p6, %p1267_p5 }
  0x60   : > { %1277 = shalt.err (!%p1274_p10)
}
  0x61   : > { %1102 = dma.hbm_to_vmem [thread:$0]  (!%p1571_p11), %s1567_s9, 256, %s1569_s11, %s1575_s12, %s1384_s16, %s1384_s16, %s1385_s17  }
  0x62   : > { %238 = sbr.rel (%p1468_p8) target bundleno = 1272 (0x4f8), region = 36  ;;  %s1609_s13 = sand.u32 (!%p1468_p8), 1, %s1372_s21  }
  0x63   : > { %s943_s15 = sshll.u32 (!%p1468_p8), %s1609_s13, 4  ;;  %s241_s28 = scalar_lea.sflag (!%p1468_p8), [#allocation4], %s1609_s13 }
  0x64   : > { %s244_s29 = scalar_lea.vmem (!%p1468_p8), [#allocation3], %s943_s15  ;;  %p1816_p4 = scmp.ne.s32.totalorder (!%p1468_p8), %s1809_s25, 0 }
  0x69   : > { %1351 = dma.done.wait (%p1816_p4), %s241_s28, 256  }
  0x6a   : > { %1353 = vsyncadd (%p1816_p4), %s241_s28, 4294967040  ;;  %p1817_p5 = scmp.eq.s32.totalorder %s1449_s3, 0 }
  0x6c   : > { %1355 = dma.done.wait (%p1817_p5), [#allocation7], 768   ;;  %p1818_p8 = pmov %p1817_p5 }
  0x6d   : > { %v1387_v0 = vmov 0.0|0.0   ;;  %vm1388_vm0 = vmmov 0   ;;  %v1389_v1 = vmov 0.0   ;;  %v1390_v2 = vmov 0   ;;  %v1624_v3 = vld [vmem:[%s244_s29] sm:$0xff]  ;;  %v1626_v4 = vld [vmem:[%s244_s29 + $0x8] sm:$0xff] }
  0x6e   : > { %1357 = vsyncadd (%p1818_p8), [#allocation7], 4294966528  ;;  %1051 = vmatprep.subr.bf16.mxu0 %v1387_v0  ;;  %1009 = vmatprep.mubr.msk.f32.mxu0 %vm1388_vm0, %v1389_v1  ;;  %v1052_v5 = vpack.c.bf16 %v1626_v4, %v1624_v3  ;;  %v290_v6 = vld [vmem:[#allocation8 + $0x10] sm:$0xf]  ;;  %v285_v7 = vld [vmem:[#allocation6] sm:$0xff]  ;;  %vm308_vm1 = vcmask 130048  }
  0x6f   : > { %1158 = vset.pattern.permute.xlu0 %v1390_v2  ;;  %1159 = vset.pattern.permute.xlu1 %v1390_v2  ;;  %v286_v8 = vld [vmem:[#allocation6 + $0x8] sm:$0xff]  ;;  %v287_v9 = vld [vmem:[#allocation6 + $0x10] sm:$0xf]  ;;  %vm458_vm2 = vcmask 1041408   ;;  %vm433_vm3 = vcmask 15360   ;;  %vm566_vm4 = vcmask 523264  }
  0x70   : > { %305 = vperm.xlu0 %1158, %v290_v6   ;;  %1053 = vmatpush3.bf16.msra.mxu0 %v1052_v5  ;;  %v288_v43 = vld [vmem:[#allocation8] sm:$0xff]  ;;  %s947_s25 = sshll.u32 %s1609_s13, 6  ;;  %vm1669_vm5 = vmpackc.low %vm566_vm4, %vm566_vm4  ;;  %s980_s16 = sshll.u32 %s1449_s3, 10 }
  0x71   : > { %s1663_s27 = scalar_lea.vmem [#allocation10], %s947_s25  ;;  %s1710_s12 = scalar_lea.hbm %s1805_s5, %s980_s16 }
  0x72   : > { %s810_s17 = sshll.u32 %s1663_s27, 4  ;;  %s781_s7 = scalar_lea.sflag [#allocation11], %s1609_s13  ;;  %s1712_s17 = int_to_ptr.vmem [resolvable:$true] %s810_s17 }
  0x73   : > { %1010 = vmatmul.mubr.msk.f32.vlgmr.msra.gmra.mrb[0].mxu0 %vm308_vm1, %v285_v7  ;;  %s1278_s6 = scalar_lea.vmem %s1712_s17, 1024  ;;  %p1821_p0 = scmp.ne.s32.totalorder %s1814_s18, 0 }
  0x74   : > { %1012 = vmatprep.mubr.msk.f32.mxu0 %vm1388_vm0, %v1389_v1  ;;  %p1279_p11 = scmp.ne.s32.totalorder %s1712_s17, %s1278_s6  ;;  %s1391_s24 = smov [#allocation10]  }
  0x75   : > { %s1282_s8 = sshll.u32 %s1391_s24, 4  ;;  %s1283_s8 = int_to_ptr.vmem [resolvable:$false] %s1282_s8 }
  0x76   : > { %p1280_p2 = pnand %p1279_p11, %p1821_p0  ;;  %s1284_s10 = scalar_lea.vmem %s1283_s8, 2048 }
  0x77   : > { %1013 = vmatmul.mubr.msk.f32.gmra.mrb[2].mxu0 %vm308_vm1, %v286_v8  ;;  %p1285_p7 = scmp.lt.s32.totalorder %s1712_s17, %s1283_s8  ;;  %p1286_p9 = scmp.lt.s32.totalorder %s1284_s10, %s1278_s6 }
  0x78   : > { %1015 = vmatprep.mubr.msk.f32.mxu0 %vm1388_vm0, %v1389_v1  ;;  %p1281_p3 = pneg %p1280_p2 }
  0x79   : > { %p1287_p12 = por %p1286_p9, %p1285_p7 }
  0x7b   : > { %1016 = vmatmul.mubr.msk.f32.gmra.mrb[4].mxu0 %vm308_vm1, %v287_v9  ;;  %p1288_p1 = pnand %p1287_p12, %p1281_p3 }
  0xef   : > { %v306_v14 = vpop.permute.xlu0 %305 }
 0x146   : > { %v1632_v10 = vpop.f32.mrb[0].mxu0 }
 0x147   : > { %v1011_v11 = vpop.f32.mrb[1].mxu0 }
 0x14a   : > { %v1634_v12 = vpop.f32.mrb[2].mxu0 }
 0x14b   : > { %v1014_v13 = vpop.f32.mrb[3].mxu0 }
 0x14e   : > { %v394_v15 = vpop.f32.mrb[4].mxu0 }
 0x14f   : > { %v395_v16 = vadd.f32 %v394_v15, %v306_v14  ;;  %v1017_v17 = vpop.f32.mrb[5].mxu0 }
 0x151   : > { %1018 = vmatprep.subr.msk.mxu0 %vm458_vm2, %v395_v16  ;;  %v399_v18 = vrot.slane %v395_v16, 2 }
 0x152   : > { %1019 = vmatpush3.msk.msra.mxu0 %vm458_vm2, %v395_v16 }
 0x153   : > { %401 = vxpose.xlu0.b32.start.end [1/1] (short) (narrow) %v399_v18, 64 }
 0x1d3   : > { %v417_v19 = vpop.trf.xlu0 }
 0x1d4   : > { %1020 = vmatprep.mubr.msk.f32.mxu0 %vm433_vm3, %v417_v19 }
 0x1d7   : > { %v418_v20 = vpop.trf.xlu0 }
 0x1d8   : > { %1021 = vmatmul.mubr.msk.f32.vlgmr.msra.gmra.mrb[6].mxu0 %vm433_vm3, %v418_v20 }
 0x1db   : > { %v419_v21 = vpop.trf.xlu0 }
 0x1dc   : > { %1023 = vmatprep.mubr.msk.f32.mxu0 %vm433_vm3, %v419_v21 }
 0x1df   : > { %v420_v22 = vpop.trf.xlu0 }
 0x1e0   : > { %1024 = vmatmul.mubr.msk.f32.gmra.mrb[8].mxu0 %vm433_vm3, %v420_v22 }
 0x1e3   : > { %v421_v23 = vpop.trf.xlu0 }
 0x1e4   : > { %1026 = vmatprep.mubr.msk.f32.mxu0 %vm433_vm3, %v421_v23 }
 0x1e7   : > { %v422_v24 = vpop.trf.xlu0 }
 0x1e8   : > { %1027 = vmatmul.mubr.msk.f32.gmra.mrb[10].mxu0 %vm433_vm3, %v422_v24 }
 0x1eb   : > { %v423_v25 = vpop.trf.xlu0 }
 0x1ec   : > { %1029 = vmatprep.mubr.msk.f32.mxu0 %vm433_vm3, %v423_v25 }
 0x1ef   : > { %v424_v26 = vpop.trf.xlu0 }
 0x1f0   : > { %1030 = vmatmul.mubr.msk.f32.gmra.mrb[12].mxu0 %vm433_vm3, %v424_v26  ;;  %v289_v26 = vld [vmem:[#allocation8 + $0x8] sm:$0xff] }
 0x2ab   : > { %v1022_v27 = vpop.f32.mrb[6].mxu0 }
 0x2ac   : > { %v527_v28 = vpop.f32.mrb[7].mxu0  ;;  %v570_v29 = vsel %vm566_vm4, %v1022_v27, -inf }
 0x2ad   : > { %571 = vmax.xlane.f32.xlu1 %v570_v29  ;;  %v567_v30 = vsel %vm566_vm4, %v527_v28, -inf }
 0x2b1   : > { %568 = vmax.xlane.f32.xlu1 %v567_v30 }
 0x2b3   : > { %v1025_v31 = vpop.f32.mrb[8].mxu0 }
 0x2b4   : > { %v537_v32 = vpop.f32.mrb[9].mxu0  ;;  %v576_v33 = vsel %vm566_vm4, %v1025_v31, -inf }
 0x2b5   : > { %577 = vmax.xlane.f32.xlu1 %v576_v33  ;;  %v573_v34 = vsel %vm566_vm4, %v537_v32, -inf }
 0x2b9   : > { %574 = vmax.xlane.f32.xlu1 %v573_v34 }
 0x2bb   : > { %v1028_v35 = vpop.f32.mrb[10].mxu0 }
 0x2bc   : > { %v547_v36 = vpop.f32.mrb[11].mxu0  ;;  %v582_v37 = vsel %vm566_vm4, %v1028_v35, -inf }
 0x2bd   : > { %583 = vmax.xlane.f32.xlu1 %v582_v37  ;;  %v579_v38 = vsel %vm566_vm4, %v547_v36, -inf }
 0x2c1   : > { %580 = vmax.xlane.f32.xlu1 %v579_v38 }
 0x2c3   : > { %v1031_v39 = vpop.f32.mrb[12].mxu0 }
 0x2c4   : > { %v557_v40 = vpop.f32.mrb[13].mxu0  ;;  %v588_v42 = vsel %vm566_vm4, %v1031_v39, -inf }
 0x2c5   : > { %v585_v41 = vsel %vm566_vm4, %v557_v40, -inf }
 0x2c6   : > { %586 = vmax.xlane.f32.xlu1 %v585_v41 }
 0x2ca   : > { %589 = vmax.xlane.f32.xlu1 %v588_v42 }
 0x2db   : > { %295 = vperm.xlu1 %1159, %v288_v43  }
 0x33a   : > { %v572_v44 = vpop.xlane.xlu1 %571 }
 0x33b   : > { %v592_v45 = vsub.f32 %v1022_v27, %v572_v44 }
 0x33d   : > { %v601_v46 = vmul.f32 1.442695, %v592_v45 }
 0x33e   : > { %v569_v47 = vpop.xlane.xlu1 %568 }
 0x33f   : > { %1160 = vpow2.f32 %v601_v46  ;;  %v591_v48 = vsub.f32 %v527_v28, %v569_v47 }
 0x341   : > { %v599_v49 = vmul.f32 1.442695, %v591_v48 }
 0x342   : > { %v578_v50 = vpop.xlane.xlu1 %577 }
 0x343   : > { %1162 = vpow2.f32 %v599_v49  ;;  %v594_v51 = vsub.f32 %v1025_v31, %v578_v50 }
 0x345   : > { %v605_v52 = vmul.f32 1.442695, %v594_v51 }
 0x346   : > { %v575_v53 = vpop.xlane.xlu1 %574 }
 0x347   : > { %1164 = vpow2.f32 %v605_v52  ;;  %v593_v54 = vsub.f32 %v537_v32, %v575_v53 }
 0x349   : > { %v1161_v55 = vpop.eup %1160  ;;  %v603_v56 = vmul.f32 1.442695, %v593_v54 }
 0x34a   : > { %v584_v57 = vpop.xlane.xlu1 %583  ;;  %v618_v58 = vsel %vm566_vm4, %v1161_v55, 0.0 }
 0x34b   : > { %1166 = vpow2.f32 %v603_v56  ;;  %v596_v59 = vsub.f32 %v1028_v35, %v584_v57  ;;  %619 = vadd.xlane.f32.xlu0 %v618_v58 }
 0x34d   : > { %v1163_v60 = vpop.eup %1162  ;;  %v609_v61 = vmul.f32 1.442695, %v596_v59 }
 0x34e   : > { %v581_v62 = vpop.xlane.xlu1 %580  ;;  %v615_v63 = vsel %vm566_vm4, %v1163_v60, 0.0 }
 0x34f   : > { %1168 = vpow2.f32 %v609_v61  ;;  %v595_v0 = vsub.f32 %v547_v36, %v581_v62  ;;  %616 = vadd.xlane.f32.xlu1 %v615_v63 }
 0x351   : > { %v1165_v1 = vpop.eup %1164  ;;  %v607_v2 = vmul.f32 1.442695, %v595_v0 }
 0x352   : > { %v624_v5 = vsel %vm566_vm4, %v1165_v1, 0.0 }
 0x353   : > { %1170 = vpow2.f32 %v607_v2  ;;  %625 = vadd.xlane.f32.xlu1 %v624_v5  ;;  %v587_v6 = vpop.xlane.xlu1 %586 }
 0x354   : > { %v597_v8 = vsub.f32 %v557_v40, %v587_v6 }
 0x355   : > { %v1167_v7 = vpop.eup %1166 }
 0x356   : > { %v621_v9 = vsel %vm566_vm4, %v1167_v7, 0.0  ;;  %v611_v15 = vmul.f32 1.442695, %v597_v8 }
 0x357   : > { %622 = vadd.xlane.f32.xlu1 %v621_v9  ;;  %v590_v11 = vpop.xlane.xlu1 %589 }
 0x358   : > { %v598_v13 = vsub.f32 %v1031_v39, %v590_v11 }
 0x359   : > { %v1169_v14 = vpop.eup %1168 }
 0x35a   : > { %v613_v16 = vmul.f32 1.442695, %v598_v13  ;;  %v630_v17 = vsel %vm566_vm4, %v1169_v14, 0.0 }
 0x35b   : > { %631 = vadd.xlane.f32.xlu1 %v630_v17  ;;  %v296_v18 = vpop.permute.xlu1 %295 }
 0x35c   : > { %1172 = vpow2.f32 %v613_v16  ;;  %v385_v19 = vadd.f32 %v1632_v10, %v296_v18 }
 0x35d   : > { %v1171_v20 = vpop.eup %1170  ;;  %1174 = vpow2.f32 %v611_v15 }
 0x35e   : > { %1048 = vmatprep.mubr.msk.f32.mxu1 %vm566_vm4, %v385_v19  ;;  %v627_v21 = vsel %vm566_vm4, %v1171_v20, 0.0 }
 0x35f   : > { %628 = vadd.xlane.f32.xlu1 %v627_v21 }
 0x366   : > { %v1173_v22 = vpop.eup %1172 }
 0x367   : > { %v636_v23 = vsel %vm566_vm4, %v1173_v22, 0.0  ;;  %v1175_v24 = vpop.eup %1174 }
 0x368   : > { %637 = vadd.xlane.f32.xlu1 %v636_v23  ;;  %v633_v25 = vsel %vm566_vm4, %v1175_v24, 0.0 }
 0x36c   : > { %634 = vadd.xlane.f32.xlu1 %v633_v25 }
 0x37d   : > { %300 = vperm.xlu1 %1159, %v289_v26  }
 0x3d8   : > { %v620_v27 = vpop.xlane.xlu0 %619 }
 0x3d9   : > { %1176 = vrcp.f32 %v620_v27 }
 0x3dc   : > { %v617_v10 = vpop.xlane.xlu1 %616 }
 0x3dd   : > { %1178 = vrcp.f32 %v617_v10 }
 0x3e0   : > { %v626_v28 = vpop.xlane.xlu1 %625 }
 0x3e1   : > { %1180 = vrcp.f32 %v626_v28 }
 0x3e3   : > { %v1177_v29 = vpop.eup %1176 }
 0x3e4   : > { %v623_v30 = vpop.xlane.xlu1 %622  ;;  %v648_v31 = vmul.f32 %v1177_v29, %v1161_v55 }
 0x3e5   : > { %1182 = vrcp.f32 %v623_v30 }
 0x3e6   : > { %768 = vst.msk [vmem:[%s1663_s27 + $0x8] sm:$0xff] %vm566_vm4, %v648_v31 }
 0x3e7   : > { %v1179_v32 = vpop.eup %1178 }
 0x3e8   : > { %v632_v33 = vpop.xlane.xlu1 %631  ;;  %v647_v34 = vmul.f32 %v1179_v32, %v1163_v60 }
 0x3e9   : > { %1184 = vrcp.f32 %v632_v33 }
 0x3ea   : > { %v1054_v36 = vpack.c.bf16 %v648_v31, %v647_v34  ;;  %767 = vst.msk [vmem:[%s1663_s27] sm:$0xff] %vm566_vm4, %v647_v34 }
 0x3eb   : > { %v1181_v37 = vpop.eup %1180 }
 0x3ec   : > { %1056 = vmatprep.subr.msk.bf16.mxu1 %vm1669_vm5, %v1054_v36  ;;  %v629_v38 = vpop.xlane.xlu1 %628  ;;  %v650_v39 = vmul.f32 %v1181_v37, %v1165_v1 }
 0x3ed   : > { %1186 = vrcp.f32 %v629_v38  ;;  %1059 = vmatpush3.bf16.xpose.msk.msra.mxu1 %vm1669_vm5, %v1054_v36 }
 0x3ee   : > { %770 = vst.msk [vmem:[%s1663_s27 + $0x18] sm:$0xff] %vm566_vm4, %v650_v39 }
 0x3ef   : > { %v1183_v40 = vpop.eup %1182 }
 0x3f0   : > { %v649_v41 = vmul.f32 %v1183_v40, %v1167_v7 }
 0x3f2   : > { %v1060_v42 = vpack.c.bf16 %v650_v39, %v649_v41  ;;  %769 = vst.msk [vmem:[%s1663_s27 + $0x10] sm:$0xff] %vm566_vm4, %v649_v41 }
 0x3f3   : > { %v1185_v43 = vpop.eup %1184 }
 0x3f4   : > { %1062 = vmatprep.subr.msk.bf16.mxu1 %vm1669_vm5, %v1060_v42  ;;  %v652_v44 = vmul.f32 %v1185_v43, %v1169_v14 }
 0x3f5   : > { %1065 = vmatpush3.bf16.xpose.msk.msra.mxu1 %vm1669_vm5, %v1060_v42  ;;  %v638_v45 = vpop.xlane.xlu1 %637 }
 0x3f6   : > { %1188 = vrcp.f32 %v638_v45  ;;  %772 = vst.msk [vmem:[%s1663_s27 + $0x28] sm:$0xff] %vm566_vm4, %v652_v44 }
 0x3f7   : > { %v1187_v46 = vpop.eup %1186 }
 0x3f8   : > { %v651_v47 = vmul.f32 %v1187_v46, %v1171_v20 }
 0x3f9   : > { %v635_v48 = vpop.xlane.xlu1 %634 }
 0x3fa   : > { %1190 = vrcp.f32 %v635_v48  ;;  %v1066_v49 = vpack.c.bf16 %v652_v44, %v651_v47  ;;  %771 = vst.msk [vmem:[%s1663_s27 + $0x20] sm:$0xff] %vm566_vm4, %v651_v47 }
 0x3fc   : > { %1068 = vmatprep.subr.msk.bf16.mxu1 %vm1669_vm5, %v1066_v49 }
 0x3fd   : > { %1071 = vmatpush3.bf16.xpose.msk.msra.mxu1 %vm1669_vm5, %v1066_v49  ;;  %v301_v55 = vpop.permute.xlu1 %300 }
 0x3fe   : > { %v390_v56 = vadd.f32 %v1634_v12, %v301_v55 }
 0x400   : > { %v1189_v50 = vpop.eup %1188 }
 0x401   : > { %v654_v51 = vmul.f32 %v1189_v50, %v1173_v22 }
 0x403   : > { %774 = vst.msk [vmem:[%s1663_s27 + $0x38] sm:$0xff] %vm566_vm4, %v654_v51 }
 0x404   : > { %v1191_v52 = vpop.eup %1190 }
 0x405   : > { %v653_v53 = vmul.f32 %v1191_v52, %v1175_v24 }
 0x407   : > { %v1072_v54 = vpack.c.bf16 %v654_v51, %v653_v53  ;;  %773 = vst.msk [vmem:[%s1663_s27 + $0x30] sm:$0xff] %vm566_vm4, %v653_v53 }
 0x409   : > { %1074 = vmatprep.subr.msk.bf16.mxu1 %vm1669_vm5, %v1072_v54 }
 0x40a   : > { %1077 = vmatpush3.bf16.xpose.msk.msra.mxu1 %vm1669_vm5, %v1072_v54 }
 0x411   : > { %1049 = vmatmul.mubr.msk.f32.vlgmr.msra.gmra.mrb[0].mxu1 %vm566_vm4, %v390_v56 }
 0x412   : > { %1291 = shalt.err (!%p1288_p1)
}
 0x413   : > { %s1292_s14 = scalar_lea.hbm %s1710_s12, 1024  ;;  %s1296_s25 = scalar_lea.hbm %s1805_s5, 2048 }
 0x414   : > { %p1293_p13 = scmp.ne.s32.totalorder %s1710_s12, %s1292_s14  ;;  %p1297_p4 = scmp.lt.u32.totalorder %s1710_s12, %s1805_s5 }
 0x415   : > { %p1298_p5 = scmp.lt.u32.totalorder %s1296_s25, %s1292_s14  ;;  %p1300_p11 = scmp.lt.u32.totalorder %s1292_s14, %s1710_s12 }
 0x416   : > { %p1294_p6 = pnand %p1293_p13, %p1821_p0 }
 0x417   : > { %p1299_p8 = por %p1298_p5, %p1297_p4 }
 0x418   : > { %p1295_p10 = pneg %p1294_p6 }
 0x419   : > { %p1301_p2 = por %p1300_p11, %p1299_p8 }
 0x41b   : > { %p1302_p3 = pnand %p1301_p2, %p1295_p10 }
 0x41d   : > { %1305 = shalt.err (!%p1302_p3)
}
 0x41e   : > { %s1392_s9 = smov 128   ;;  %s1393_s11 = smov 8  }
 0x41f   : > { %1089 = dma.vmem_to_hbm [thread:$0]  (%p1821_p0), %s1712_s17, 1024, %s1710_s12, %s781_s7, %s1392_s9, %s1392_s9, %s1393_s11  }
 0x420   : > { %s284_s6 = sld [smem:[#allocation2]]  ;;  %s979_s24 = sshll.u32 %s1449_s3, 8 }
 0x421   : > { %s276_s8 = scalar_lea.vmem [#allocation9], %s943_s15  ;;  %s1749_s17 = scalar_lea.hbm %s1804_s4, %s979_s24 }
 0x422   : > { %s794_s10 = sshll.u32 %s276_s8, 4  ;;  %s776_s3 = scalar_lea.sflag [#allocation5], %s1609_s13  ;;  %s1751_s10 = int_to_ptr.vmem [resolvable:$true] %s794_s10 }
 0x423   : > { %s1306_s15 = scalar_lea.vmem %s1751_s10, 256  ;;  %s1394_s12 = smov [#allocation9]  }
 0x424   : > { %p1307_p7 = scmp.ne.s32.totalorder %s1751_s10, %s1306_s15  ;;  %s1310_s7 = sshll.u32 %s1394_s12, 4  ;;  %s1311_s7 = int_to_ptr.vmem [resolvable:$false] %s1310_s7 }
 0x425   : > { %s1312_s29 = scalar_lea.vmem %s1311_s7, 512  ;;  %p1313_p1 = scmp.lt.s32.totalorder %s1751_s10, %s1311_s7 }
 0x426   : > { %v760_v12 = vstv %s284_s6  ;;  %p1308_p9 = pnand %p1307_p7, %p1821_p0  ;;  %p1314_p13 = scmp.lt.s32.totalorder %s1312_s29, %s1306_s15 }
 0x428   : > { %p1309_p12 = pneg %p1308_p9  ;;  %p1315_p6 = por %p1314_p13, %p1313_p1 }
 0x42a   : > { %p1316_p10 = pnand %p1315_p6, %p1309_p12 }
 0x4e4   : > { %v1050_v57 = vpop.f32.mrb[0].mxu1 }
 0x4e5   : > { %v762_v58 = vmul.f32 %v1050_v57, %v760_v12  ;;  %v751_v59 = vpop.f32.mrb[1].mxu1 }
 0x4e6   : > { %v761_v60 = vmul.f32 %v760_v12, %v751_v59 }
 0x4e7   : > { %v764_v61 = vadd.f32 %v762_v58, %v1626_v4 }
 0x4e8   : > { %v763_v62 = vadd.f32 %v761_v60, %v1624_v3 }
 0x4e9   : > { %766 = vst.msk [vmem:[%s276_s8 + $0x8] sm:$0xff] %vm566_vm4, %v764_v61 }
 0x4ea   : > { %765 = vst.msk [vmem:[%s276_s8] sm:$0xff] %vm566_vm4, %v763_v62 }
 0x4eb   : > { %1319 = shalt.err (!%p1316_p10)
}
 0x4ec   : > { %s1320_s25 = scalar_lea.hbm %s1749_s17, 256  ;;  %s1324_s6 = scalar_lea.hbm %s1804_s4, 512 }
 0x4ed   : > { %p1321_p4 = scmp.ne.s32.totalorder %s1749_s17, %s1320_s25  ;;  %p1325_p11 = scmp.lt.u32.totalorder %s1749_s17, %s1804_s4 }
 0x4ee   : > { %p1326_p2 = scmp.lt.u32.totalorder %s1324_s6, %s1320_s25  ;;  %p1328_p7 = scmp.lt.u32.totalorder %s1320_s25, %s1749_s17 }
 0x4ef   : > { %p1322_p5 = pnand %p1321_p4, %p1821_p0 }
 0x4f0   : > { %p1327_p3 = por %p1326_p2, %p1325_p11 }
 0x4f1   : > { %p1323_p8 = pneg %p1322_p5 }
 0x4f2   : > { %p1329_p9 = por %p1328_p7, %p1327_p3 }
 0x4f4   : > { %p1330_p12 = pnand %p1329_p9, %p1323_p8 }
 0x4f6   : > { %1333 = shalt.err (!%p1330_p12)
}
 0x4f7   : > { %1088 = dma.vmem_to_hbm [thread:$0]  (%p1821_p0), %s1751_s10, 256, %s1749_s17, %s776_s3, %s1392_s9, %s1392_s9, %s1393_s11  }
 0x4f8 PF: > { %s825_s14 = sand.u32 1, %s1368_s20   ;;  %p1822_p1 = scmp.ne.s32.totalorder %s1810_s26, 0 }
 0x4f9   : > { %p1823_p13 = scmp.ge.s32.totalorder %s1380_s23, 2  ;;  %s826_s28 = scalar_lea.sflag [#allocation5], %s825_s14 }
 0x4fb   : > { %p1104_p6 = pnand %p1823_p13, %p1822_p1 }
 0x4fd   : > { %1359 = dma.done.wait (!%p1104_p6), %s826_s28, 256  }
 0x4fe   : > { %1361 = vsyncadd (!%p1104_p6), %s826_s28, 4294967040  ;;  %s835_s18 = scalar_lea.sflag [#allocation11], %s825_s14 }
 0x4ff   : > { %1363 = dma.done.wait (!%p1104_p6), %s835_s18, 1024  }
 0x500   : > { %1365 = vsyncadd (!%p1104_p6), %s835_s18, 4294966272  ;;  %p24_p0 = scmp.ge.s32.totalorder %s1544_s30, 4   ;;  %s1824_s20 = smov %s1372_s21 }
 0x501   : > { %s1825_s21 = smov %s1376_s22  ;;  %s1826_s22 = smov %s1560_s19 }
 0x502   : > { %s1827_s23 = smov %s1544_s30  ;;  %26 = sbr.rel (!%p24_p0) target bundleno = 10 (0xa), region = 106 }
 0x509   :  { %840 = vsyncpa [#allocation4], 1 }
 0x50a   :  { %842 = vsyncpa [#allocation4 + $0x1], 1 }
 0x50b   :  { %843 = vsyncpa [#allocation7], 1 }
 0x50c   :  { %844 = vsyncpa [#allocation5], 1 }
 0x50d   :  { %846 = vsyncpa [#allocation5 + $0x1], 1 }
 0x50e   :  { %847 = vsyncpa [#allocation11], 1 }
 0x50f   :  { %849 = vsyncpa [#allocation11 + $0x1], 1 }

</bundles_post_ra>
